<compile_context>
chip_gen: v7x
topology: tpu7x:2x2x1
jax: 0.10.0
libtpu: 0.0.40
codegen_flags: <defaults>
</compile_context>

<pallas_src>
import jax
import jax.numpy as jnp
from jax.experimental import pallas as pl
from jax.experimental.pallas import tpu as pltpu

_LANE = 128


def _round_up(x, m):
    return ((x + m - 1) // m) * m


def _default_tile_bytes():
    """Per-input, per-buffer VMEM tile target, chosen per TPU generation."""
    try:
        info = pltpu.get_tpu_info()
        vmem = getattr(info, "vmem_capacity_bytes", 0)
        if vmem and vmem >= 100 * 1024 * 1024:      # v5e / v6e: 128 MiB VMEM
            return 8 * 1024 * 1024
    except Exception:
        pass
    return 4 * 1024 * 1024                          # v7x-safe default (64 MiB)


def _make_loss_kernel(n_rows, row_tile, n_cols, ragged, binary_labels):
    """Kernel factory: one grid step maps a (row_tile, n_cols) tile to a
    (1, n_cols) lane-dense partial sum.  All shape info is static/closed over."""

    def kernel(pred_ref, y_ref, partial_ref):
        p = pred_ref[...].astype(jnp.float32)
        y = y_ref[...].astype(jnp.float32)

        if ragged:
            # cdiv grid: the last tile extends past the real row count; its
            # out-of-bounds rows hold undefined VMEM data.  Mask them to a
            # safe value BEFORE the log and zero their contribution after.
            row0 = pl.program_id(0) * row_tile
            row = jax.lax.broadcasted_iota(jnp.int32, (row_tile, n_cols), 0)
            valid = (row0 + row) < n_rows
            p = jnp.where(valid, p, 0.5)
            y = jnp.where(valid, y, 0.5)

        if binary_labels:
            # (1-y)*log(1-p) + y*log(p) == log(where(y>0.5, p, 1-p)) for binary y.
            loss_a = jnp.log(jnp.where(y > 0.5, p, 1.0 - p))
        else:
            # Exact reference formula (soft labels supported).
            loss_a = (1.0 - y) * jnp.log(1.0 - p) + y * jnp.log(p)

        if ragged:
            loss_a = jnp.where(valid, loss_a, 0.0)

        # One sublane reduction per tile; the tiny cross-program/cross-lane
        # reduce happens once in the wrapper.
        partial_ref[0] = jnp.sum(loss_a, axis=0, keepdims=True)

    return kernel


def _loss_sum_2d(pred2d, y2d, *, binary_labels, tile_bytes):
    """Pallas sum of the per-element loss over a 2-D (R, C) view."""
    R, C = pred2d.shape
    item_p = pred2d.dtype.itemsize
    item_y = y2d.dtype.itemsize

    # Sublane alignment for the block shape (8 for 4-byte, 16 for 2-byte, ...).
    align = {4: 8, 2: 16, 1: 32}.get(min(item_p, item_y), 8)

    c_pad = _round_up(C, _LANE)                      # VMEM lane padding
    bytes_per_row = c_pad * max(item_p, item_y)
    rows_cap = max(align, (tile_bytes // bytes_per_row) // align * align)
    # Keep >= ~4 grid steps when possible so megacore / v7x dual-TC can split.
    rows_target = max(align, _round_up(pl.cdiv(R, 4), align))
    row_tile = min(rows_cap, rows_target)
    if row_tile >= R:
        row_tile = R                                  # single full-dim block
    grid = pl.cdiv(R, row_tile)
    ragged = (R % row_tile) != 0

    kernel = _make_loss_kernel(R, row_tile, C, ragged, binary_labels)

    n_elems = R * C
    in_bytes = n_elems * (item_p + item_y)
    out_bytes = grid * C * 4
    vmem_buf_bytes = 2 * row_tile * c_pad * (item_p + item_y)   # double-buffered inputs
    vmem_limit = min(max(32 * 1024 * 1024, vmem_buf_bytes + 8 * 1024 * 1024),
                     48 * 1024 * 1024)

    partials = pl.pallas_call(
        kernel,
        out_shape=jax.ShapeDtypeStruct((grid, 1, C), jnp.float32),
        grid=(grid,),
        in_specs=[
            pl.BlockSpec((row_tile, C), lambda i: (i, 0)),
            pl.BlockSpec((row_tile, C), lambda i: (i, 0)),
        ],
        out_specs=pl.BlockSpec((1, 1, C), lambda i: (i, 0, 0)),
        compiler_params=pltpu.CompilerParams(
            # Per-program partial outputs -> no shared accumulator -> safe to
            # mark 'parallel' (megacore / v7x dual-TensorCore sharding).
            dimension_semantics=("parallel",),
            vmem_limit_bytes=vmem_limit,
        ),
        cost_estimate=pl.CostEstimate(
            flops=6 * n_elems,
            transcendentals=(1 if binary_labels else 2) * n_elems,
            bytes_accessed=in_bytes + out_bytes,
        ),
    )(pred2d, y2d)

    return jnp.sum(partials)


def _loss_jnp(pred, y, binary_labels):
    """Plain-XLA fallback for small inputs (kernel launch not worth it)."""
    p = pred.astype(jnp.float32)
    t = y.astype(jnp.float32)
    if binary_labels:
        loss_a = jnp.log(jnp.where(t > 0.5, p, 1.0 - p))
    else:
        loss_a = (1.0 - t) * jnp.log(1.0 - p) + t * jnp.log(p)
    return jnp.sum(loss_a) / jnp.float32(-p.size)


def loss_func(pred, y, *, binary_labels=True, small_input_threshold=1 << 20,
              force_pallas=False, tile_bytes=None):
    """Pallas implementation of LossFunc.forward(pred, y, train)."""
    assert pred.shape == y.shape, (pred.shape, y.shape)
    total = pred.size

    if total == 0 or (not force_pallas and total < small_input_threshold):
        # Tiny inputs: a single XLA fusion beats any kernel launch.
        return _loss_jnp(pred, y, binary_labels)

    if tile_bytes is None:
        tile_bytes = _default_tile_bytes()

    if total % _LANE == 0:
        # Lane-dense view via a free (bitcast) reshape of the contiguous array.
        rows = total // _LANE
        loss_sum = _loss_sum_2d(pred.reshape(rows, _LANE), y.reshape(rows, _LANE),
                                binary_labels=binary_labels, tile_bytes=tile_bytes)
    elif pred.ndim >= 2 and pred.shape[-1] >= 32:
        # Keep the natural last dim as the (full-dim) lane axis; collapse the
        # leading dims (free reshape).  HBM traffic stays exactly the real data.
        C = pred.shape[-1]
        loss_sum = _loss_sum_2d(pred.reshape(total // C, C), y.reshape(total // C, C),
                                binary_labels=binary_labels, tile_bytes=tile_bytes)
    else:
        # Rare fallback (1-D odd-length input or a very narrow last dim):
        # pad the flat view by < 128 elements with (pred=0.5, y=0.5), which
        # contributes exactly log(0.5) per pad element in BOTH formulas; the
        # known constant is subtracted afterwards.
        pad = _round_up(total, _LANE) - total
        pred_f = jnp.pad(pred.reshape(-1).astype(jnp.float32), (0, pad),
                         constant_values=0.5)
        y_f = jnp.pad(y.reshape(-1).astype(jnp.float32), (0, pad),
                      constant_values=0.5)
        rows = pred_f.size // _LANE
        loss_sum = _loss_sum_2d(pred_f.reshape(rows, _LANE), y_f.reshape(rows, _LANE),
                                binary_labels=binary_labels, tile_bytes=tile_bytes)
        loss_sum = loss_sum - jnp.float32(pad) * jnp.log(jnp.float32(0.5))

    # Normalize by the REAL element count (torch.numel).
    return loss_sum / jnp.float32(-total)


def loss_func_ref(pred, y):
    # Reference: the original two-term formulation (valid when pred is in (0,1)).
    loss_a = (1.0 - y) * jnp.log(1.0 - pred) + y * jnp.log(pred)
    return jnp.sum(loss_a) / (-1.0 * loss_a.size)


if __name__ == "__main__":
    key = jax.random.PRNGKey(0)
    k_p, k_y, k_h, k_p2, k_y2, k_p3, k_y3 = jax.random.split(key, 7)

    # BCH(63,45): codeword length 63, parity checks 18.  Small batch of 16.
    batch, n_code, n_checks = 16, 63, 18

    # Deterministic synthetic "H" (unused in forward, mirrors module __init__).
    H = (jax.random.uniform(k_h, (n_code, n_checks)) > 0.5).astype(jnp.float32)
    _ = H  # TODO(synk): H is stored by the PyTorch module but never used in forward.

    # pred strictly inside (0, 1) so log() stays finite; y is binary.
    pred = jax.random.uniform(k_p, (batch, n_code), dtype=jnp.float32,
                              minval=0.05, maxval=0.95)
    y = (jax.random.uniform(k_y, (batch, n_code)) > 0.5).astype(jnp.float32)
    ref = loss_func_ref(pred, y)

    # (a) Forced Pallas path on the natural (batch, 63) layout (copy-free view).
    loss_a = loss_func(pred, y, force_pallas=True)
    jax.block_until_ready(loss_a)
    assert jnp.allclose(loss_a, ref, rtol=1e-5, atol=1e-5), (loss_a, ref)

    # (b) Exact two-term kernel variant (soft-label-safe path).
    loss_b = loss_func(pred, y, binary_labels=False, force_pallas=True)
    jax.block_until_ready(loss_b)
    assert jnp.allclose(loss_b, ref, rtol=1e-5, atol=1e-5), (loss_b, ref)

    # (c) Default call: small-input jnp fallback.
    loss_c = loss_func(pred, y)
    jax.block_until_ready(loss_c)
    assert jnp.allclose(loss_c, ref, rtol=1e-5, atol=1e-5), (loss_c, ref)

    # (d) Lane-dense path with a ragged tail tile (total % 128 == 0, rows=75).
    pred2 = jax.random.uniform(k_p2, (100, 96), dtype=jnp.float32,
                               minval=0.05, maxval=0.95)
    y2 = (jax.random.uniform(k_y2, (100, 96)) > 0.5).astype(jnp.float32)
    ref2 = loss_func_ref(pred2, y2)
    loss_d = loss_func(pred2, y2, force_pallas=True)
    jax.block_until_ready(loss_d)
    assert jnp.allclose(loss_d, ref2, rtol=1e-5, atol=1e-5), (loss_d, ref2)

    # (e) 1-D odd-length input -> rare tiny-pad fallback path.
    pred3 = jax.random.uniform(k_p3, (1000,), dtype=jnp.float32,
                               minval=0.05, maxval=0.95)
    y3 = (jax.random.uniform(k_y3, (1000,)) > 0.5).astype(jnp.float32)
    ref3 = loss_func_ref(pred3, y3)
    loss_e = loss_func(pred3, y3, force_pallas=True)
    jax.block_until_ready(loss_e)
    assert jnp.allclose(loss_e, ref3, rtol=1e-5, atol=1e-5), (loss_e, ref3)

    print("KERNEL_OK")
</pallas_src>

<mosaic_0001>
module attributes {stable_mosaic.version = 11 : i64} {
  func.func @kernel(%arg0: i32, %arg1: memref<8x63xf32, #tpu.memory_space<vmem>>, %arg2: memref<8x63xf32, #tpu.memory_space<vmem>>, %arg3: memref<1x1x63xf32, #tpu.memory_space<vmem>>) attributes {dimension_semantics = [#tpu.dimension_semantics<parallel>], iteration_bounds = array<i64: 2>, scalar_prefetch = 0 : i64, scratch_operands = 0 : i64, tpu.core_type = #tpu.core_type<tc>, window_params = [{transform_indices = @transform_0, window_bounds = array<i64: 8, 63>}, {transform_indices = @transform_1, window_bounds = array<i64: 8, 63>}, {transform_indices = @transform_2, window_bounds = array<i64: 1, 1, 63>}]} {
    %c0 = arith.constant 0 : index
    %c0_0 = arith.constant 0 : index
    %0 = vector.load %arg1[%c0, %c0_0] : memref<8x63xf32, #tpu.memory_space<vmem>>, vector<8x63xf32>
    %c0_1 = arith.constant 0 : index
    %c0_2 = arith.constant 0 : index
    %1 = vector.load %arg2[%c0_1, %c0_2] : memref<8x63xf32, #tpu.memory_space<vmem>>, vector<8x63xf32>
    %cst = arith.constant 5.000000e-01 : f32
    %2 = vector.broadcast %cst : f32 to vector<8x63xf32>
    %3 = arith.cmpf ogt, %1, %2 : vector<8x63xf32>
    %cst_3 = arith.constant 1.000000e+00 : f32
    %4 = vector.broadcast %cst_3 : f32 to vector<8x63xf32>
    %5 = arith.subf %4, %0 : vector<8x63xf32>
    %6 = arith.select %3, %0, %5 : vector<8x63xi1>, vector<8x63xf32>
    %7 = math.log %6 : vector<8x63xf32>
    %cst_4 = arith.constant dense<0.000000e+00> : vector<63xf32>
    %8 = vector.multi_reduction <add>, %7, %cst_4 [0] : vector<8x63xf32> to vector<63xf32>
    %9 = vector.shape_cast %8 : vector<63xf32> to vector<1x63xf32>
    %c0_5 = arith.constant 0 : index
    %c0_6 = arith.constant 0 : index
    %c0_7 = arith.constant 0 : index
    %10 = vector.load %arg3[%c0_5, %c0_6, %c0_7] : memref<1x1x63xf32, #tpu.memory_space<vmem>>, vector<1x1x63xf32>
    %11 = vector.shape_cast %10 : vector<1x1x63xf32> to vector<1x63xf32>
    %12 = vector.shape_cast %9 : vector<1x63xf32> to vector<1x1x63xf32>
    tpu.vector_store %arg3[%c0_5, %c0_6, %c0_7], %12 {strides = array<i32>} : memref<1x1x63xf32, #tpu.memory_space<vmem>>, vector<1x1x63xf32>,
    return
  }
  func.func @transform_0(%arg0: i32) -> (i32, i32) {
    %c0_i32 = arith.constant 0 : i32
    %c0_i32_0 = arith.constant 0 : i32
    return %arg0, %c0_i32 : i32, i32
  }
  func.func @transform_1(%arg0: i32) -> (i32, i32) {
    %c0_i32 = arith.constant 0 : i32
    %c0_i32_0 = arith.constant 0 : i32
    return %arg0, %c0_i32 : i32, i32
  }
  func.func @transform_2(%arg0: i32) -> (i32, i32, i32) {
    %c0_i32 = arith.constant 0 : i32
    %c0_i32_0 = arith.constant 0 : i32
    %c0_i32_1 = arith.constant 0 : i32
    return %arg0, %c0_i32, %c0_i32_0 : i32, i32, i32
  }
}

</mosaic_0001>

<bundles_post_ra>
// kernel: tpu_custom_call.1
= control target key start
LH: loop header
LB: loop body
LE: loop exit
PB: predicated region body
PF: predicated region fallthrough
CT: control target
= control target key end

     0   :  { %7 = vsyncpa [#allocation3], 0  ;;  %s740_s0 = inlined_call_operand.hbm [shape: f32[16,63], index: 0, kind: input, shape index: {}]   ;;  %s741_s1 = inlined_call_operand.hbm [shape: f32[16,63], index: 1, kind: input, shape index: {}]   ;;  %s742_s2 = inlined_call_operand.hbm [shape: f32[2,1,63], index: 2, kind: output, shape index: {}]  }
   0x1   :  { %9 = vsyncpa [#allocation3 + $0x1], 0 }
   0x2   :  { %10 = vsyncpa [#allocation6], 0 }
   0x3   :  { %12 = vsyncpa [#allocation6 + $0x1], 0 }
   0x4   :  { %13 = vsyncpa [#allocation4], 0 }
   0x5   :  { %15 = vsyncpa [#allocation4 + $0x1], 0  ;;  %s530_s9 = smov 0   ;;  %s532_s10 = smov 0  }
   0x6   :  { %s534_s11 = smov 0   ;;  %s536_s12 = smov 0  }
   0x7 LB: > { %s551_s13 = sadd.s32 4294967295, %s510_s12   ;;  %s314_s14 = sadd.s32 4294967294, %s510_s12   ;;  %s510_s12 = sphi %s536_s12, %s761_s12   ;;  %s506_s11 = sphi %s534_s11, %s760_s11   ;;  %s502_s10 = sphi %s532_s10, %s759_s10   ;;  %s498_s9 = sphi %s530_s9, %s758_s9  }
   0x8   : > { %s555_s15 = sadd.s32 1, %s510_s12   ;;  %s28_s16 = sadd.s32 1, %s506_s11 }
   0x9   : > { %s25_s17 = ssub.s32 %s510_s12, %s555_s15  ;;  %p35_p0 = scmp.ne.s32.totalorder %s506_s11, %s502_s10 }
   0xa   : > { %p26_p1 = scmp.eq.s32.totalorder %s25_s17, 0  ;;  %p36_p2 = scmp.eq.s32.totalorder %s510_s12, 0 }
   0xb   : > { %p41_p3 = scmp.ne.s32.totalorder %s502_s10, %s498_s9  ;;  %p42_p4 = scmp.eq.s32.totalorder %s551_s13, 0 }
   0xc   : > { %s567_s18 = scalar_select %p26_p1, %s506_s11, %s28_s16  }
   0xd   : > { %p569_p5 = por %p36_p2, %p35_p0  ;;  %p573_p6 = por %p42_p4, %p41_p3 }
   0xe   : > { %p91_p7 = scmp.eq.s32.totalorder %s551_s13, 1  ;;  %p97_p8 = scmp.eq.s32.totalorder %s314_s14, 1 }
   0xf   : > { %s746_s20 = scalar_select %p573_p6, 1, 0 }
  0x10   : > { %p344_p10 = scmp.lt.s32.totalorder %s510_s12, 2  ;;  %p580_p11 = por %p91_p7, %p35_p0 }
  0x11   : > { %p584_p12 = por %p97_p8, %p41_p3  ;;  %s589_s23 = sand.u32 1, %s506_s11  }
  0x12   : > { %s747_s21 = scalar_select %p580_p11, 1, 0 }
  0x13   : > { %s748_s22 = scalar_select %p584_p12, 1, 0 }
  0x14   : > { %s318_s24 = sshll.u32 %s510_s12, 7  ;;  %s317_s25 = sshll.u32 %s589_s23, 3 }
  0x15   : > { %s598_s28 = scalar_lea.hbm %s740_s0, %s318_s24  ;;  %s121_s29 = scalar_lea.vmem [#allocation2], %s317_s25 }
  0x16   : > { %s128_s30 = sshll.u32 %s121_s29, 4  ;;  %p604_p13 = pnand %p344_p10, %p569_p5  ;;  %s608_s30 = int_to_ptr.vmem [resolvable:$true] %s128_s30 }
  0x17   : > { %s118_s4 = scalar_lea.sflag [#allocation3], %s589_s23  ;;  %s380_s5 = scalar_lea.hbm %s598_s28, 128 }
  0x18   : > { %p381_p2 = scmp.ne.s32.totalorder %s598_s28, %s380_s5  ;;  %p382_p3 = pneg %p604_p13 }
  0x19   : > { %s385_s8 = scalar_lea.hbm %s740_s0, 256  ;;  %p386_p5 = scmp.lt.u32.totalorder %s598_s28, %s740_s0 }
  0x1a   : > { %p383_p4 = pnand %p382_p3, %p381_p2  ;;  %p387_p8 = scmp.lt.u32.totalorder %s385_s8, %s380_s5 }
  0x1b   : > { %p389_p9 = scmp.lt.u32.totalorder %s380_s5, %s598_s28 }
  0x1c   : > { %p384_p7 = pneg %p383_p4  ;;  %p388_p10 = por %p387_p8, %p386_p5 }
  0x1e   : > { %p390_p0 = por %p389_p9, %p388_p10 }
  0x20   : > { %p391_p1 = pnand %p390_p0, %p384_p7 }
  0x22   : > { %394 = shalt.err (!%p391_p1)
}
  0x23   : > { %s395_s17 = scalar_lea.vmem %s608_s30, 128  ;;  %s512_s19 = smov [#allocation2]  }
  0x24   : > { %p396_p2 = scmp.ne.s32.totalorder %s608_s30, %s395_s17  ;;  %s400_s26 = sshll.u32 %s512_s19, 4  ;;  %s401_s26 = int_to_ptr.vmem [resolvable:$false] %s400_s26 }
  0x25   : > { %s402_s27 = scalar_lea.vmem %s401_s26, 256  ;;  %p403_p11 = scmp.lt.s32.totalorder %s608_s30, %s401_s26 }
  0x26   : > { %p398_p4 = pnand %p396_p2, %p382_p3  ;;  %p404_p5 = scmp.lt.s32.totalorder %s402_s27, %s395_s17 }
  0x28   : > { %p399_p12 = pneg %p398_p4  ;;  %p405_p8 = por %p404_p5, %p403_p11 }
  0x2a   : > { %p406_p9 = pnand %p405_p8, %p399_p12 }
  0x2c   : > { %409 = shalt.err (!%p406_p9)
}
  0x2d   : > { %336 = dma.hbm_to_vmem [thread:$0]  (!%p604_p13), %s598_s28, 128, %s608_s30, %s118_s4  }
  0x2e   : > { %p750_p0 = scmp.lt.s32.totalorder %s510_s12, 3  ;;  %p751_p1 = scmp.ge.s32.totalorder %s510_s12, 1 }
  0x2f   : > { %s651_s7 = scalar_lea.hbm %s741_s1, %s318_s24  ;;  %s139_s8 = scalar_lea.vmem [#allocation5], %s317_s25 }
  0x30   : > { %p642_p7 = pnand %p751_p1, %p750_p0  ;;  %s146_s14 = sshll.u32 %s139_s8, 4  ;;  %s147_s14 = int_to_ptr.vmem [resolvable:$true] %s146_s14 }
  0x31   : > { %s136_s28 = scalar_lea.sflag [#allocation6], %s589_s23  ;;  %s410_s30 = scalar_lea.hbm %s651_s7, 128 }
  0x32   : > { %s752_s29 = scalar_select %p642_p7, 1, 0 }
  0x33   : > { %p411_p11 = scmp.ne.s32.totalorder %s651_s7, %s410_s30  ;;  %s415_s24 = scalar_lea.hbm %s741_s1, 256 }
  0x34   : > { %p416_p2 = scmp.lt.u32.totalorder %s651_s7, %s741_s1  ;;  %p417_p4 = scmp.lt.u32.totalorder %s415_s24, %s410_s30 }
  0x35   : > { %p413_p12 = pnand %p411_p11, %p382_p3  ;;  %p419_p8 = scmp.lt.u32.totalorder %s410_s30, %s651_s7 }
  0x36   : > { %p418_p5 = por %p417_p4, %p416_p2 }
  0x37   : > { %p414_p10 = pneg %p413_p12 }
  0x38   : > { %p420_p9 = por %p419_p8, %p418_p5 }
  0x3a   : > { %p421_p0 = pnand %p420_p9, %p414_p10 }
  0x3c   : > { %424 = shalt.err (!%p421_p0)
}
  0x3d   : > { %s425_s23 = scalar_lea.vmem %s147_s14, 128  ;;  %s513_s25 = smov [#allocation5]  }
  0x3e   : > { %p426_p1 = scmp.ne.s32.totalorder %s147_s14, %s425_s23  ;;  %s430_s26 = sshll.u32 %s513_s25, 4  ;;  %s431_s26 = int_to_ptr.vmem [resolvable:$false] %s430_s26 }
  0x3f   : > { %s432_s27 = scalar_lea.vmem %s431_s26, 256  ;;  %p433_p6 = scmp.lt.s32.totalorder %s147_s14, %s431_s26 }
  0x40   : > { %p428_p11 = pnand %p426_p1, %p382_p3  ;;  %p434_p7 = scmp.lt.s32.totalorder %s432_s27, %s425_s23 }
  0x42   : > { %p429_p12 = pneg %p428_p11  ;;  %p435_p2 = por %p434_p7, %p433_p6 }
  0x44   : > { %p436_p4 = pnand %p435_p2, %p429_p12 }
  0x46   : > { %439 = shalt.err (!%p436_p4)
}
  0x47   : > { %339 = dma.hbm_to_vmem [thread:$0]  (!%p604_p13), %s651_s7, 128, %s147_s14, %s136_s28  }
  0x48   : > { %p753_p10 = scmp.ne.s32.totalorder %s752_s29, 0 }
  0x49   : > { %s678_s5 = sand.u32 (!%p753_p10), 1, %s502_s10   ;;  %p754_p3 = scmp.ne.s32.totalorder (!%p753_p10), %s746_s20, 0 }
  0x4a   : > { %155 = sbr.rel (%p753_p10) target bundleno = 128 (0x80), region = 28  ;;  %s322_s6 = sshll.u32 (!%p753_p10), %s678_s5, 3 }
  0x4b   : > { %s158_s8 = scalar_lea.sflag (!%p753_p10), [#allocation3], %s678_s5  ;;  %s161_s30 = scalar_lea.vmem (!%p753_p10), [#allocation2], %s322_s6 }
  0x51   : > { %485 = dma.done.wait (%p754_p3), %s158_s8, 128  }
  0x52   : > { %487 = vsyncadd (%p754_p3), %s158_s8, 4294967168  ;;  %s167_s3 = scalar_lea.sflag [#allocation6], %s678_s5  ;;  %s170_s7 = scalar_lea.vmem [#allocation5], %s322_s6 }
  0x53   : > { %489 = dma.done.wait (%p754_p3), %s167_s3, 128  }
  0x54   : > { %491 = vsyncadd (%p754_p3), %s167_s3, 4294967168  ;;  %v195_v0 = vld [vmem:[%s161_s30] sm:$0xff]  ;;  %v196_v1 = vld [vmem:[%s170_s7] sm:$0xff]  ;;  %vm202_vm1 = vcmask 515072   ;;  %s194_s20 = scalar_lea.vmem [#allocation7], %s678_s5  ;;  %s324_s14 = sshll.u32 %s551_s13, 4 }
  0x55   : > { %vm197_vm0 = vcmp.gt.f32.partialorder %v196_v1, 0.5  ;;  %v198_v2 = vsub.f32 1.0, %v195_v0  ;;  %s225_s29 = sshll.u32 %s194_s20, 4  ;;  %vm210_vm2 = vcmask 507904   ;;  %s698_s16 = scalar_lea.hbm %s742_s2, %s324_s14  ;;  %s693_s29 = int_to_ptr.vmem [resolvable:$true] %s225_s29 }
  0x56   : > { %s213_s24 = scalar_lea.sflag [#allocation4], %s678_s5  ;;  %s440_s17 = scalar_lea.vmem %s693_s29, 16 }
  0x57   : > { %v199_v3 = vsel %vm197_vm0, %v195_v0, %v198_v2  ;;  %p441_p6 = scmp.ne.s32.totalorder %s693_s29, %s440_s17  ;;  %p755_p13 = scmp.ne.s32.totalorder %s747_s21, 0 }
  0x58   : > { %378 = vlog2.f32 %v199_v3  ;;  %s514_s13 = smov [#allocation7]  }
  0x59   : > { %p442_p7 = pnand %p441_p6, %p755_p13  ;;  %s444_s19 = sshll.u32 %s514_s13, 4  ;;  %s445_s19 = int_to_ptr.vmem [resolvable:$false] %s444_s19 }
  0x5a   : > { %s446_s23 = scalar_lea.vmem %s445_s19, 32  ;;  %p447_p8 = scmp.lt.s32.totalorder %s693_s29, %s445_s19 }
  0x5b   : > { %p443_p5 = pneg %p442_p7  ;;  %p448_p9 = scmp.lt.s32.totalorder %s446_s23, %s440_s17 }
  0x5d   : > { %p449_p0 = por %p448_p9, %p447_p8 }
  0x5f   : > { %p450_p1 = pnand %p449_p0, %p443_p5 }
  0x62   : > { %v379_v4 = vpop.eup %378 }
  0x63   : > { %v201_v5 = vmul.f32 0.6931472, %v379_v4 }
  0x65   : > { %v203_v6 = vsel %vm202_vm1, %v201_v5, 0.0 }
  0x66   : > { %v204_v7 = vrot.slane %v203_v6, 4 }
  0x68   : > { %v205_v8 = vadd.f32 %v204_v7, %v203_v6 }
  0x6a   : > { %v206_v9 = vrot.slane %v205_v8, 2 }
  0x6c   : > { %v207_v10 = vadd.f32 %v206_v9, %v205_v8 }
  0x6e   : > { %v208_v11 = vrot.slane %v207_v10, 1 }
  0x70   : > { %v209_v12 = vadd.f32 %v208_v11, %v207_v10 }
  0x72   : > { %211 = vst.msk [vmem:[%s194_s20] sm:$0x1] %vm210_vm2, %v209_v12 }
  0x73   : > { %453 = shalt.err (!%p450_p1)
}
  0x74   : > { %s454_s25 = scalar_lea.hbm %s698_s16, 16  ;;  %s458_s5 = scalar_lea.hbm %s742_s2, 32 }
  0x75   : > { %p455_p11 = scmp.ne.s32.totalorder %s698_s16, %s454_s25  ;;  %p459_p4 = scmp.lt.u32.totalorder %s698_s16, %s742_s2 }
  0x76   : > { %p460_p10 = scmp.lt.u32.totalorder %s458_s5, %s454_s25  ;;  %p462_p6 = scmp.lt.u32.totalorder %s454_s25, %s698_s16 }
  0x77   : > { %p456_p12 = pnand %p455_p11, %p755_p13 }
  0x78   : > { %p461_p3 = por %p460_p10, %p459_p4 }
  0x79   : > { %p457_p2 = pneg %p456_p12 }
  0x7a   : > { %p463_p7 = por %p462_p6, %p461_p3 }
  0x7c   : > { %p464_p5 = pnand %p463_p7, %p457_p2 }
  0x7e   : > { %467 = shalt.err (!%p464_p5)
}
  0x7f   : > { %331 = dma.vmem_to_hbm [thread:$0]  (%p755_p13), %s693_s29, 16, %s698_s16, %s213_s24  }
  0x80 PF: > { %s237_s30 = sand.u32 1, %s498_s9   ;;  %p756_p8 = scmp.ne.s32.totalorder %s748_s22, 0 }
  0x81   : > { %p757_p9 = scmp.ge.s32.totalorder %s510_s12, 2  ;;  %s238_s3 = scalar_lea.sflag [#allocation4], %s237_s30 }
  0x83   : > { %p341_p0 = pnand %p757_p9, %p756_p8 }
  0x85   : > { %493 = dma.done.wait (!%p341_p0), %s238_s3, 16  }
  0x86   : > { %495 = vsyncadd (!%p341_p0), %s238_s3, 4294967280  ;;  %p18_p1 = scmp.ge.s32.totalorder %s555_s15, 4   ;;  %s758_s9 = smov %s502_s10 }
  0x87   : > { %s759_s10 = smov %s506_s11  ;;  %s760_s11 = smov %s567_s18 }
  0x88   : > { %s761_s12 = smov %s555_s15  ;;  %20 = sbr.rel (!%p18_p1) target bundleno = 7 (0x7), region = 86 }
  0x8f   :  { %242 = vsyncpa [#allocation3], 1 }
  0x90   :  { %244 = vsyncpa [#allocation3 + $0x1], 1 }
  0x91   :  { %245 = vsyncpa [#allocation6], 1 }
  0x92   :  { %247 = vsyncpa [#allocation6 + $0x1], 1 }
  0x93   :  { %248 = vsyncpa [#allocation4], 1 }
  0x94   :  { %250 = vsyncpa [#allocation4 + $0x1], 1 }

</bundles_post_ra>
